<compile_context>
chip_gen: v7x
topology: tpu7x:2x2x1
jax: 0.10.0
libtpu: 0.0.40
codegen_flags: <defaults>
</compile_context>

<pallas_src>
import jax
import jax.numpy as jnp
from jax.experimental import pallas as pl
from jax.experimental.pallas import tpu as pltpu


def _attention_fusion_kernel(v1_ref, v2_ref, v3_ref, w_ref, o_ref):
    v1 = v1_ref[...].astype(jnp.float32)          # [TB, D]
    v2 = v2_ref[...].astype(jnp.float32)          # [TB, D]
    v3 = v3_ref[...].astype(jnp.float32)          # [TB, D]
    w = w_ref[...].astype(jnp.float32)            # [1, D]

    # Attention logits: per-row dot product with the weight vector -> [TB, 1].
    # Kept on VPU (multiply) + XLU (cross-lane reduce); intentionally not MXU.
    s1 = jnp.sum(v1 * w, axis=-1, keepdims=True)
    s2 = jnp.sum(v2 * w, axis=-1, keepdims=True)
    s3 = jnp.sum(v3 * w, axis=-1, keepdims=True)

    # Numerically stable softmax over the 3 logits (per row).
    m = jnp.maximum(jnp.maximum(s1, s2), s3)
    e1 = jnp.exp(s1 - m)
    e2 = jnp.exp(s2 - m)
    e3 = jnp.exp(s3 - m)
    denom = e1 + e2 + e3

    # Exact divide: compute is fully hidden under HBM DMA, so the exact
    # reciprocal is free and restores ~1e-5 accuracy.
    fused = (e1 * v1 + e2 * v2 + e3 * v3) / denom
    o_ref[...] = fused.astype(o_ref.dtype)


def _round_up(x, m):
    return ((x + m - 1) // m) * m


def _pick_tile_rows(batch, feat, itemsize):
    """Pick batch-tile rows (TB) and an explicit vmem_limit_bytes.

    Generation-aware: queries VMEM capacity (v5e/v6e: 128 MiB, v7x: 64 MiB
    per TensorCore) and budgets both the double-buffered pipeline blocks and
    the in-kernel f32 intermediates.
    """
    # Sub-32-bit dtypes pack along sublanes: f32 -> 8 rows, bf16 -> 16, i8 -> 32.
    sublane = max(8, 32 // max(itemsize, 1))

    try:
        vmem_cap = int(pltpu.get_tpu_info().vmem_capacity_bytes)
    except Exception:  # pragma: no cover - conservative fallback (v7x per-TC)
        vmem_cap = 64 * 1024 * 1024

    # Use ~1/3 of physical VMEM for this kernel's working set; the rest is
    # headroom for compiler temporaries / whatever else shares the core.
    budget = vmem_cap // 3

    # Per-row bytes:
    #   (3 inputs + 1 output) x double-buffered pipeline blocks at I/O dtype
    #   + ~5 full-width f32 intermediates live inside the body
    per_row = (3 + 1) * 2 * feat * itemsize + 5 * feat * 4
    tb = budget // max(per_row, 1)
    tb = max(sublane, min(tb, 2048))

    # Never larger than the (sublane-rounded) batch itself.
    tb = min(tb, _round_up(batch, sublane))

    # Guarantee >= 2 grid steps when possible: lets v7x shard the "parallel"
    # batch axis across its two TensorCores and keeps the pipeline overlapped.
    if batch > sublane:
        half = _round_up((batch + 1) // 2, sublane)
        tb = min(tb, half)

    tb = max(sublane, (tb // sublane) * sublane)

    # Explicit scoped-VMEM limit: what we actually need plus slack, never
    # below the 32 MiB default, never above ~75% of physical capacity.
    needed = per_row * tb + 2 * feat * 4 + (4 << 20)
    vmem_limit = max(needed, 32 << 20)
    vmem_limit = min(vmem_limit, int(vmem_cap * 0.75))
    vmem_limit = max(vmem_limit, needed)  # safety if capacity is tiny
    return int(tb), int(vmem_limit)


def attention_fusion_3d(v1, v2, v3, w):
    """v1, v2, v3: [B, D]; w: [1, D] (== nn.Linear(D, 1, bias=False).weight)."""
    B, D = v1.shape
    assert v2.shape == (B, D) and v3.shape == (B, D) and w.shape == (1, D)
    # NOTE: D % 128 == 0 keeps output stores unmasked (lane-dense); pad D at
    # model-build time if needed.  Correctness holds for any D.

    itemsize = jnp.dtype(v1.dtype).itemsize
    tb, vmem_limit = _pick_tile_rows(B, D, itemsize)

    grid = (pl.cdiv(B, tb),)
    tile_spec = pl.BlockSpec((tb, D), lambda i: (i, 0))
    w_spec = pl.BlockSpec((1, D), lambda i: (0, 0))

    cost = pl.CostEstimate(
        flops=9 * B * D,
        transcendentals=3 * B,
        bytes_accessed=4 * B * D * itemsize + D * jnp.dtype(w.dtype).itemsize,
    )

    out = pl.pallas_call(
        _attention_fusion_kernel,
        out_shape=jax.ShapeDtypeStruct((B, D), v1.dtype),
        grid=grid,
        in_specs=[tile_spec, tile_spec, tile_spec, w_spec],
        out_specs=pl.BlockSpec((tb, D), lambda i: (i, 0)),
        compiler_params=pltpu.CompilerParams(
            dimension_semantics=("parallel",),
            vmem_limit_bytes=vmem_limit,
        ),
        cost_estimate=cost,
    )(v1, v2, v3, w)
    return out


def attention_fusion_3d_ref(v1, v2, v3, w):
    stacked = jnp.stack([v1, v2, v3], axis=1)                # [B, 3, D]
    logits = jnp.einsum("bkd,d->bk", stacked, w[0])          # [B, 3]
    weights = jax.nn.softmax(logits, axis=1)                 # [B, 3]
    return (weights[:, 0:1] * v1
            + weights[:, 1:2] * v2
            + weights[:, 2:3] * v3)


if __name__ == "__main__":
    # Small shapes consistent with the module (input_dim default = 512).
    D = 512
    key = jax.random.PRNGKey(0)
    k1, k2, k3, kw = jax.random.split(key, 4)

    # Deterministic init mimicking nn.Linear default: U(-1/sqrt(D), 1/sqrt(D)).
    bound = 1.0 / (D ** 0.5)
    w = jax.random.uniform(kw, (1, D), dtype=jnp.float32,
                           minval=-bound, maxval=bound)

    ok = True
    # Two batch sizes: one even split (16 -> grid of 2) and one that
    # exercises the partial-last-block path (13, no padding / slicing).
    for B in (16, 13):
        v1 = jax.random.normal(k1, (B, D), dtype=jnp.float32)
        v2 = jax.random.normal(k2, (B, D), dtype=jnp.float32)
        v3 = jax.random.normal(k3, (B, D), dtype=jnp.float32)

        out = attention_fusion_3d(v1, v2, v3, w)
        out = jax.block_until_ready(out)

        ref = attention_fusion_3d_ref(v1, v2, v3, w)
        assert out.shape == (B, D)
        ok = ok and bool(jnp.allclose(out, ref, atol=1e-5, rtol=1e-5))

    assert ok, "mismatch vs reference"
    print("KERNEL_OK")
</pallas_src>

<mosaic_0001>
module attributes {stable_mosaic.version = 11 : i64} {
  func.func @_attention_fusion_kernel(%arg0: i32, %arg1: memref<8x512xf32, #tpu.memory_space<vmem>>, %arg2: memref<8x512xf32, #tpu.memory_space<vmem>>, %arg3: memref<8x512xf32, #tpu.memory_space<vmem>>, %arg4: memref<1x512xf32, #tpu.memory_space<vmem>>, %arg5: memref<8x512xf32, #tpu.memory_space<vmem>>) attributes {dimension_semantics = [#tpu.dimension_semantics<parallel>], iteration_bounds = array<i64: 2>, scalar_prefetch = 0 : i64, scratch_operands = 0 : i64, tpu.core_type = #tpu.core_type<tc>, window_params = [{transform_indices = @transform_0, window_bounds = array<i64: 8, 512>}, {transform_indices = @transform_1, window_bounds = array<i64: 8, 512>}, {transform_indices = @transform_2, window_bounds = array<i64: 8, 512>}, {pipeline_mode = #tpu.pipeline_mode<synchronous>, transform_indices = @transform_3, window_bounds = array<i64: 1, 512>}, {transform_indices = @transform_4, window_bounds = array<i64: 8, 512>}]} {
    %c0 = arith.constant 0 : index
    %c0_0 = arith.constant 0 : index
    %0 = vector.load %arg1[%c0, %c0_0] : memref<8x512xf32, #tpu.memory_space<vmem>>, vector<8x512xf32>
    %c0_1 = arith.constant 0 : index
    %c0_2 = arith.constant 0 : index
    %1 = vector.load %arg2[%c0_1, %c0_2] : memref<8x512xf32, #tpu.memory_space<vmem>>, vector<8x512xf32>
    %c0_3 = arith.constant 0 : index
    %c0_4 = arith.constant 0 : index
    %2 = vector.load %arg3[%c0_3, %c0_4] : memref<8x512xf32, #tpu.memory_space<vmem>>, vector<8x512xf32>
    %c0_5 = arith.constant 0 : index
    %c0_6 = arith.constant 0 : index
    %3 = vector.load %arg4[%c0_5, %c0_6] : memref<1x512xf32, #tpu.memory_space<vmem>>, vector<1x512xf32>
    %4 = vector.broadcast %3 : vector<1x512xf32> to vector<8x512xf32>
    %5 = arith.mulf %0, %4 : vector<8x512xf32>
    %cst = arith.constant dense<0.000000e+00> : vector<8xf32>
    %6 = vector.multi_reduction <add>, %5, %cst [1] : vector<8x512xf32> to vector<8xf32>
    %7 = vector.shape_cast %6 : vector<8xf32> to vector<8x1xf32>
    %8 = vector.broadcast %3 : vector<1x512xf32> to vector<8x512xf32>
    %9 = arith.mulf %1, %8 : vector<8x512xf32>
    %cst_7 = arith.constant dense<0.000000e+00> : vector<8xf32>
    %10 = vector.multi_reduction <add>, %9, %cst_7 [1] : vector<8x512xf32> to vector<8xf32>
    %11 = vector.shape_cast %10 : vector<8xf32> to vector<8x1xf32>
    %12 = vector.broadcast %3 : vector<1x512xf32> to vector<8x512xf32>
    %13 = arith.mulf %2, %12 : vector<8x512xf32>
    %cst_8 = arith.constant dense<0.000000e+00> : vector<8xf32>
    %14 = vector.multi_reduction <add>, %13, %cst_8 [1] : vector<8x512xf32> to vector<8xf32>
    %15 = vector.shape_cast %14 : vector<8xf32> to vector<8x1xf32>
    %16 = arith.maximumf %7, %11 : vector<8x1xf32>
    %17 = arith.maximumf %16, %15 : vector<8x1xf32>
    %18 = arith.subf %7, %17 : vector<8x1xf32>
    %19 = math.exp %18 : vector<8x1xf32>
    %20 = arith.subf %11, %17 : vector<8x1xf32>
    %21 = math.exp %20 : vector<8x1xf32>
    %22 = arith.subf %15, %17 : vector<8x1xf32>
    %23 = math.exp %22 : vector<8x1xf32>
    %24 = arith.addf %19, %21 : vector<8x1xf32>
    %25 = arith.addf %24, %23 : vector<8x1xf32>
    %26 = vector.broadcast %19 : vector<8x1xf32> to vector<8x512xf32>
    %27 = arith.mulf %26, %0 : vector<8x512xf32>
    %28 = vector.broadcast %21 : vector<8x1xf32> to vector<8x512xf32>
    %29 = arith.mulf %28, %1 : vector<8x512xf32>
    %30 = arith.addf %27, %29 : vector<8x512xf32>
    %31 = vector.broadcast %23 : vector<8x1xf32> to vector<8x512xf32>
    %32 = arith.mulf %31, %2 : vector<8x512xf32>
    %33 = arith.addf %30, %32 : vector<8x512xf32>
    %34 = vector.broadcast %25 : vector<8x1xf32> to vector<8x512xf32>
    %35 = arith.divf %33, %34 : vector<8x512xf32>
    %c0_9 = arith.constant 0 : index
    %c0_10 = arith.constant 0 : index
    %36 = vector.load %arg5[%c0_9, %c0_10] : memref<8x512xf32, #tpu.memory_space<vmem>>, vector<8x512xf32>
    tpu.vector_store %arg5[%c0_9, %c0_10], %35 {strides = array<i32>} : memref<8x512xf32, #tpu.memory_space<vmem>>, vector<8x512xf32>,
    return
  }
  func.func @transform_0(%arg0: i32) -> (i32, i32) {
    %c0_i32 = arith.constant 0 : i32
    %c0_i32_0 = arith.constant 0 : i32
    return %arg0, %c0_i32 : i32, i32
  }
  func.func @transform_1(%arg0: i32) -> (i32, i32) {
    %c0_i32 = arith.constant 0 : i32
    %c0_i32_0 = arith.constant 0 : i32
    return %arg0, %c0_i32 : i32, i32
  }
  func.func @transform_2(%arg0: i32) -> (i32, i32) {
    %c0_i32 = arith.constant 0 : i32
    %c0_i32_0 = arith.constant 0 : i32
    return %arg0, %c0_i32 : i32, i32
  }
  func.func @transform_3(%arg0: i32) -> (i32, i32) {
    %c0_i32 = arith.constant 0 : i32
    %c0_i32_0 = arith.constant 0 : i32
    %c0_i32_1 = arith.constant 0 : i32
    return %c0_i32, %c0_i32_0 : i32, i32
  }
  func.func @transform_4(%arg0: i32) -> (i32, i32) {
    %c0_i32 = arith.constant 0 : i32
    %c0_i32_0 = arith.constant 0 : i32
    return %arg0, %c0_i32 : i32, i32
  }
}

</mosaic_0001>

<bundles_post_ra>
// kernel: tpu_custom_call.1
= control target key start
LH: loop header
LB: loop body
LE: loop exit
PB: predicated region body
PF: predicated region fallthrough
CT: control target
= control target key end

     0   :  { %s1037_s0 = inlined_call_operand.hbm [shape: f32[16,512], index: 0, kind: input, shape index: {}]   ;;  %s1038_s1 = inlined_call_operand.hbm [shape: f32[16,512], index: 1, kind: input, shape index: {}]   ;;  %s1039_s2 = inlined_call_operand.hbm [shape: f32[16,512], index: 2, kind: input, shape index: {}]   ;;  %s1040_s3 = inlined_call_operand.vmem [shape: f32[1,512], index: 3, kind: input, shape index: {}]   ;;  %s1041_s4 = inlined_call_operand.hbm [shape: f32[16,512], index: 4, kind: output, shape index: {}]  }
   0x1   :  { %1046 = sst [smem:[#allocation13_spill]] %s1038_s1 }
   0x2   :  { %9 = vsyncpa [#allocation3], 0 }
   0x3   :  { %11 = vsyncpa [#allocation3 + $0x1], 0 }
   0x4   :  { %12 = vsyncpa [#allocation6], 0 }
   0x5   :  { %14 = vsyncpa [#allocation6 + $0x1], 0 }
   0x6   :  { %15 = vsyncpa [#allocation4], 0 }
   0x7   :  { %17 = vsyncpa [#allocation4 + $0x1], 0  ;;  %s799_s15 = smov 0   ;;  %s801_s16 = smov 0  }
   0x8   :  { %s803_s17 = smov 0   ;;  %s805_s18 = smov 0  }
   0x9 LB: > { %s820_s19 = sadd.s32 4294967295, %s768_s18   ;;  %s518_s20 = sadd.s32 4294967294, %s768_s18   ;;  %s768_s18 = sphi %s805_s18, %s1067_s18   ;;  %s764_s17 = sphi %s803_s17, %s1066_s17   ;;  %s760_s16 = sphi %s801_s16, %s1065_s16   ;;  %s756_s15 = sphi %s799_s15, %s1064_s15  }
   0xa   : > { %s824_s21 = sadd.s32 1, %s768_s18   ;;  %s30_s22 = sadd.s32 1, %s764_s17 }
   0xb   : > { %s27_s23 = ssub.s32 %s768_s18, %s824_s21  ;;  %p37_p0 = scmp.ne.s32.totalorder %s764_s17, %s760_s16 }
   0xc   : > { %p28_p1 = scmp.eq.s32.totalorder %s27_s23, 0  ;;  %p38_p2 = scmp.eq.s32.totalorder %s768_s18, 0 }
   0xd   : > { %p43_p3 = scmp.ne.s32.totalorder %s760_s16, %s756_s15  ;;  %p44_p4 = scmp.eq.s32.totalorder %s820_s19, 0 }
   0xe   : > { %s836_s24 = scalar_select %p28_p1, %s764_s17, %s30_s22  }
   0xf   : > { %p39_p5 = por %p38_p2, %p37_p0  ;;  %p838_p6 = por %p44_p4, %p43_p3 }
  0x10   : > { %1047 = sst [smem:[#allocation12_spill]] %s836_s24  ;;  %p140_p7 = scmp.eq.s32.totalorder %s820_s19, 1 }
  0x11   : > { %s1048_s25 = scalar_select %p838_p6, 1, 0 }
  0x12   : > { %p146_p8 = scmp.eq.s32.totalorder %s518_s20, 1  ;;  %p566_p10 = scmp.lt.s32.totalorder %s768_s18, 2 }
  0x13   : > { %p845_p11 = por %p140_p7, %p37_p0  ;;  %s169_s28 = sand.u32 1, %s764_s17  }
  0x14   : > { %p849_p12 = por %p146_p8, %p43_p3  ;;  %s855_s29 = sshll.u32 %s768_s18, 9 }
  0x15   : > { %s1049_s26 = scalar_select %p845_p11, 1, 0 }
  0x16   : > { %s1050_s27 = scalar_select %p849_p12, 1, 0 }
  0x17   : > { %s859_s30 = sshll.u32 %s169_s28, 5  ;;  %p861_p13 = pnand %p566_p10, %p39_p5 }
  0x18   : > { %s188_s6 = sand.u32 1, %s768_s18   ;;  %s1052_s1 = sld [smem:[#allocation13_spill]] }
  0x19   : > { %s1051_s5 = scalar_select %p861_p13, 1, 0 }
  0x1a   : > { %s192_s10 = scalar_lea.vmem [#allocation5], %s859_s30  ;;  %s876_s12 = scalar_lea.sflag [#allocation6], %s188_s6 }
  0x1b   : > { %s200_s11 = sshll.u32 %s192_s10, 4  ;;  %p882_p2 = pneg %p861_p13  ;;  %s873_s11 = int_to_ptr.vmem [resolvable:$true] %s200_s11 }
  0x1e   : > { %s870_s9 = scalar_lea.hbm %s1052_s1, %s855_s29  ;;  %s613_s23 = scalar_lea.hbm %s1052_s1, 1024 }
  0x1f   : > { %s608_s13 = scalar_lea.hbm %s870_s9, 512  ;;  %p614_p5 = scmp.lt.u32.totalorder %s870_s9, %s1052_s1 }
  0x20   : > { %p609_p1 = scmp.ne.s32.totalorder %s870_s9, %s608_s13  ;;  %p615_p7 = scmp.lt.u32.totalorder %s613_s23, %s608_s13 }
  0x21   : > { %p617_p10 = scmp.lt.u32.totalorder %s608_s13, %s870_s9 }
  0x22   : > { %p611_p3 = pnand %p882_p2, %p609_p1  ;;  %p616_p8 = por %p615_p7, %p614_p5 }
  0x24   : > { %p612_p4 = pneg %p611_p3  ;;  %p618_p9 = por %p617_p10, %p616_p8 }
  0x26   : > { %p619_p0 = pnand %p618_p9, %p612_p4 }
  0x28   : > { %622 = shalt.err (!%p619_p0)
}
  0x29   : > { %s623_s6 = scalar_lea.vmem %s873_s11, 512  ;;  %s770_s10 = smov [#allocation5]  }
  0x2a   : > { %p624_p1 = scmp.ne.s32.totalorder %s873_s11, %s623_s6  ;;  %s628_s20 = sshll.u32 %s770_s10, 4  ;;  %s629_s20 = int_to_ptr.vmem [resolvable:$false] %s628_s20 }
  0x2b   : > { %s630_s22 = scalar_lea.vmem %s629_s20, 1024  ;;  %p631_p11 = scmp.lt.s32.totalorder %s873_s11, %s629_s20 }
  0x2c   : > { %p626_p3 = pnand %p624_p1, %p882_p2  ;;  %p632_p6 = scmp.lt.s32.totalorder %s630_s22, %s623_s6 }
  0x2e   : > { %p627_p12 = pneg %p626_p3  ;;  %p633_p5 = por %p632_p6, %p631_p11 }
  0x30   : > { %p634_p7 = pnand %p633_p5, %p627_p12 }
  0x32   : > { %637 = shalt.err (!%p634_p7)
}
  0x33   : > { %558 = dma.hbm_to_vmem [thread:$0]  (!%p861_p13), %s870_s9, 512, %s873_s11, %s876_s12  }
  0x34   : > { %p224_p9 = scmp.lt.s32.totalorder %s768_s18, 3  ;;  %s911_s7 = scalar_lea.hbm %s1037_s0, %s855_s29 }
  0x35   : > { %p1054_p6 = scmp.ge.s32.totalorder %s768_s18, 1  ;;  %s173_s6 = scalar_lea.vmem [#allocation2], %s859_s30 }
  0x36   : > { %s181_s10 = sshll.u32 %s173_s6, 4  ;;  %s170_s9 = scalar_lea.sflag [#allocation3], %s169_s28  ;;  %s182_s10 = int_to_ptr.vmem [resolvable:$true] %s181_s10 }
  0x37   : > { %p915_p11 = pnand %p1054_p6, %p224_p9  ;;  %s638_s11 = scalar_lea.hbm %s911_s7, 512 }
  0x38   : > { %p639_p12 = scmp.ne.s32.totalorder %s911_s7, %s638_s11  ;;  %s643_s13 = scalar_lea.hbm %s1037_s0, 1024 }
  0x39   : > { %s1055_s8 = scalar_select %p915_p11, 1, 0 }
  0x3a   : > { %p641_p0 = pnand %p639_p12, %p882_p2  ;;  %p644_p8 = scmp.lt.u32.totalorder %s911_s7, %s1037_s0 }
  0x3b   : > { %p645_p10 = scmp.lt.u32.totalorder %s643_s13, %s638_s11  ;;  %p647_p3 = scmp.lt.u32.totalorder %s638_s11, %s911_s7 }
  0x3c   : > { %p642_p4 = pneg %p641_p0 }
  0x3d   : > { %p646_p1 = por %p645_p10, %p644_p8 }
  0x3f   : > { %p648_p5 = por %p647_p3, %p646_p1 }
  0x41   : > { %p649_p7 = pnand %p648_p5, %p642_p4 }
  0x43   : > { %652 = shalt.err (!%p649_p7)
}
  0x44   : > { %s653_s28 = scalar_lea.vmem %s182_s10, 512  ;;  %s771_s6 = smov [#allocation2]  }
  0x45   : > { %p654_p9 = scmp.ne.s32.totalorder %s182_s10, %s653_s28  ;;  %s658_s24 = sshll.u32 %s771_s6, 4  ;;  %s659_s24 = int_to_ptr.vmem [resolvable:$false] %s658_s24 }
  0x46   : > { %s660_s20 = scalar_lea.vmem %s659_s24, 1024  ;;  %p661_p0 = scmp.lt.s32.totalorder %s182_s10, %s659_s24 }
  0x47   : > { %p656_p6 = pnand %p654_p9, %p882_p2  ;;  %p662_p11 = scmp.lt.s32.totalorder %s660_s20, %s653_s28 }
  0x49   : > { %p657_p12 = pneg %p656_p6  ;;  %p663_p13 = por %p662_p11, %p661_p0 }
  0x4b   : > { %p664_p8 = pnand %p663_p13, %p657_p12 }
  0x4d   : > { %667 = shalt.err (!%p664_p8)
}
  0x4e   : > { %p1056_p10 = scmp.ne.s32.totalorder %s1051_s5, 0  ;;  %s943_s22 = scalar_lea.hbm %s1039_s2, %s855_s29 }
  0x4f   : > { %s211_s24 = scalar_lea.vmem [#allocation7], %s859_s30  ;;  %s668_s23 = scalar_lea.hbm %s943_s22, 512 }
  0x50   : > { %555 = dma.hbm_to_vmem [thread:$0]  (!%p1056_p10), %s911_s7, 512, %s182_s10, %s170_s9  }
  0x51   : > { %s219_s13 = sshll.u32 %s211_s24, 4  ;;  %p669_p13 = scmp.ne.s32.totalorder %s943_s22, %s668_s23  ;;  %s220_s13 = int_to_ptr.vmem [resolvable:$true] %s219_s13 }
  0x52   : > { %s673_s7 = scalar_lea.hbm %s1039_s2, 1024  ;;  %p674_p1 = scmp.lt.u32.totalorder %s943_s22, %s1039_s2 }
  0x53   : > { %p671_p11 = pnand %p669_p13, %p882_p2  ;;  %p675_p3 = scmp.lt.u32.totalorder %s673_s7, %s668_s23 }
  0x54   : > { %p677_p7 = scmp.lt.u32.totalorder %s668_s23, %s943_s22 }
  0x55   : > { %p672_p4 = pneg %p671_p11  ;;  %p676_p5 = por %p675_p3, %p674_p1 }
  0x57   : > { %p678_p9 = por %p677_p7, %p676_p5 }
  0x59   : > { %p679_p6 = pnand %p678_p9, %p672_p4 }
  0x5b   : > { %682 = shalt.err (!%p679_p6)
}
  0x5c   : > { %s683_s29 = scalar_lea.vmem %s220_s13, 512  ;;  %s772_s30 = smov [#allocation7]  }
  0x5d   : > { %p684_p12 = scmp.ne.s32.totalorder %s220_s13, %s683_s29  ;;  %s688_s20 = sshll.u32 %s772_s30, 4  ;;  %s689_s20 = int_to_ptr.vmem [resolvable:$false] %s688_s20 }
  0x5e   : > { %s690_s1 = scalar_lea.vmem %s689_s20, 1024  ;;  %p691_p13 = scmp.lt.s32.totalorder %s220_s13, %s689_s20 }
  0x5f   : > { %p686_p0 = pnand %p684_p12, %p882_p2  ;;  %p692_p11 = scmp.lt.s32.totalorder %s690_s1, %s683_s29 }
  0x61   : > { %p687_p8 = pneg %p686_p0  ;;  %p693_p10 = por %p692_p11, %p691_p13 }
  0x63   : > { %p694_p1 = pnand %p693_p10, %p687_p8 }
  0x65   : > { %697 = shalt.err (!%p694_p1)
}
  0x66   : > { %p1057_p3 = scmp.ne.s32.totalorder %s1051_s5, 0  ;;  %p1058_p4 = scmp.ne.s32.totalorder %s1055_s8, 0 }
  0x67   : > { %s967_s14 = sand.u32 (!%p1058_p4), 1, %s760_s16   ;;  %p1059_p2 = scmp.ne.s32.totalorder (!%p1058_p4), %s1048_s25, 0 }
  0x68   : > { %561 = dma.hbm_to_vmem [thread:$0]  (!%p1057_p3), %s943_s22, 512, %s220_s13, %s876_s12  }
  0x69   : > { %228 = sbr.rel (%p1058_p4) target bundleno = 330 (0x14a), region = 36  ;;  %s970_s11 = sshll.u32 (!%p1058_p4), %s967_s14, 5 }
  0x6a   : > { %s231_s24 = scalar_lea.sflag (!%p1058_p4), [#allocation3], %s967_s14  ;;  %s234_s23 = scalar_lea.vmem (!%p1058_p4), [#allocation2], %s970_s11 }
  0x70   : > { %743 = dma.done.wait (%p1059_p2), %s231_s24, 512  }
  0x71   : > { %745 = vsyncadd (%p1059_p2), %s231_s24, 4294966784  ;;  %s239_s5 = sand.u32 1, %s820_s19   ;;  %s243_s8 = scalar_lea.vmem [#allocation5], %s970_s11 }
  0x72   : > { %s240_s12 = scalar_lea.sflag [#allocation6], %s239_s5 }
  0x73   : > { %747 = dma.done.wait (%p1059_p2), %s240_s12, 1024  }
  0x74   : > { %749 = vsyncadd (%p1059_p2), %s240_s12, 4294966272  ;;  %v301_v0 = vlaneseq  ;;  %v287_v6 = vld [vmem:[%s234_s23] sm:$0xff]  ;;  %v288_v7 = vld [vmem:[%s234_s23 + $0x8] sm:$0xff]  ;;  %s252_s25 = scalar_lea.vmem [#allocation7], %s970_s11  ;;  %s543_s28 = sshll.u32 %s820_s19, 9 }
  0x75   : > { %v289_v8 = vld [vmem:[%s234_s23 + $0x10] sm:$0xff]  ;;  %v290_v9 = vld [vmem:[%s234_s23 + $0x18] sm:$0xff]  ;;  %v299_v10 = vld [vmem:[%s1040_s3] sm:$0xf]  ;;  %s286_s6 = scalar_lea.vmem [#allocation8], %s970_s11  ;;  %s993_s29 = scalar_lea.hbm %s1041_s4, %s543_s28 }
  0x76   : > { %v302_v1 = vshrl.u32 %v301_v0, 7  ;;  %v291_v15 = vld [vmem:[%s243_s8] sm:$0xff]  ;;  %v292_v16 = vld [vmem:[%s243_s8 + $0x8] sm:$0xff]  ;;  %v293_v17 = vld [vmem:[%s243_s8 + $0x10] sm:$0xff]  ;;  %s405_s7 = sshll.u32 %s286_s6, 4  ;;  %s391_s19 = scalar_lea.sflag [#allocation4], %s967_s14  ;;  %s995_s7 = int_to_ptr.vmem [resolvable:$true] %s405_s7 }
  0x77   : > { %v295_v18 = vld [vmem:[%s252_s25] sm:$0xff]  ;;  %v296_v19 = vld [vmem:[%s252_s25 + $0x8] sm:$0xff]  ;;  %v297_v20 = vld [vmem:[%s252_s25 + $0x10] sm:$0xff]  ;;  %s698_s30 = scalar_lea.vmem %s995_s7, 512  ;;  %p1060_p5 = scmp.ne.s32.totalorder %s1049_s26, 0 }
  0x78   : > { %v303_v2 = vsub.s32 0, %v302_v1  ;;  %v307_v3 = vsub.s32 1, %v302_v1  ;;  %v311_v4 = vsub.s32 2, %v302_v1  ;;  %v315_v5 = vsub.s32 3, %v302_v1  ;;  %v294_v25 = vld [vmem:[%s243_s8 + $0x18] sm:$0xff]  ;;  %p699_p10 = scmp.ne.s32.totalorder %s995_s7, %s698_s30  ;;  %s773_s20 = smov [#allocation8]  }
  0x79   : > { %v298_v29 = vld [vmem:[%s252_s25 + $0x18] sm:$0xff]  ;;  %s702_s1 = sshll.u32 %s773_s20, 4  ;;  %s703_s1 = int_to_ptr.vmem [resolvable:$false] %s702_s1 }
  0x7a   : > { %v304_v11 = vrot.slane %v299_v10, %v303_v2  ;;  %v308_v12 = vrot.slane %v299_v10, %v307_v3  ;;  %v312_v13 = vrot.slane %v299_v10, %v311_v4  ;;  %v316_v14 = vrot.slane %v299_v10, %v315_v5  ;;  %p700_p7 = pnand %p699_p10, %p1060_p5  ;;  %s704_s11 = scalar_lea.vmem %s703_s1, 1024 }
  0x7b   : > { %p705_p6 = scmp.lt.s32.totalorder %s995_s7, %s703_s1  ;;  %p706_p12 = scmp.lt.s32.totalorder %s704_s11, %s698_s30 }
  0x7c   : > { %v321_v21 = vmul.f32 %v304_v11, %v287_v6  ;;  %v322_v22 = vmul.f32 %v308_v12, %v288_v7  ;;  %v323_v23 = vmul.f32 %v312_v13, %v289_v8  ;;  %v324_v24 = vmul.f32 %v316_v14, %v290_v9  ;;  %p701_p9 = pneg %p700_p7 }
  0x7d   : > { %v330_v26 = vmul.f32 %v304_v11, %v291_v15  ;;  %v331_v27 = vmul.f32 %v308_v12, %v292_v16  ;;  %v332_v28 = vmul.f32 %v312_v13, %v293_v17  ;;  %v339_v31 = vmul.f32 %v304_v11, %v295_v18  ;;  %p707_p0 = por %p706_p12, %p705_p6 }
  0x7e   : > { %v325_v30 = vadd.f32 %v322_v22, %v321_v21  ;;  %v340_v32 = vmul.f32 %v308_v12, %v296_v19  ;;  %v341_v33 = vmul.f32 %v312_v13, %v297_v20  ;;  %v333_v36 = vmul.f32 %v316_v14, %v294_v25 }
  0x7f   : > { %v334_v34 = vadd.f32 %v331_v27, %v330_v26  ;;  %v342_v37 = vmul.f32 %v316_v14, %v298_v29  ;;  %p708_p8 = pnand %p707_p0, %p701_p9 }
  0x80   : > { %v326_v35 = vadd.f32 %v325_v30, %v323_v23  ;;  %v343_v38 = vadd.f32 %v340_v32, %v339_v31 }
  0x81   : > { %v335_v39 = vadd.f32 %v334_v34, %v332_v28 }
  0x82   : > { %v327_v40 = vadd.f32 %v326_v35, %v324_v24  ;;  %v344_v41 = vadd.f32 %v343_v38, %v341_v33 }
  0x83   : > { %v336_v42 = vadd.f32 %v335_v39, %v333_v36 }
  0x84   : > { %328 = vadd.xlane.f32.xlu0 %v327_v40  ;;  %v345_v43 = vadd.f32 %v344_v41, %v342_v37 }
  0x86   : > { %346 = vadd.xlane.f32.xlu1 %v345_v43 }
  0x88   : > { %337 = vadd.xlane.f32.xlu0 %v336_v42 }
 0x111   : > { %v329_v44 = vpop.xlane.xlu0 %328 }
 0x113   : > { %v347_v46 = vpop.xlane.xlu1 %346 }
 0x115   : > { %v338_v45 = vpop.xlane.xlu0 %337 }
 0x116   : > { %v348_v47 = vmax.f32 %v329_v44, %v338_v45 }
 0x118   : > { %v349_v48 = vmax.f32 %v348_v47, %v347_v46 }
 0x11a   : > { %v350_v49 = vsub.f32 %v329_v44, %v349_v48  ;;  %v353_v50 = vsub.f32 %v338_v45, %v349_v48  ;;  %v356_v51 = vsub.f32 %v347_v46, %v349_v48 }
 0x11c   : > { %v351_v52 = vmul.f32 1.442695, %v350_v49  ;;  %v354_v53 = vmul.f32 1.442695, %v353_v50  ;;  %v357_v54 = vmul.f32 1.442695, %v356_v51 }
 0x11e   : > { %600 = vpow2.f32 %v351_v52 }
 0x11f   : > { %602 = vpow2.f32 %v354_v53 }
 0x120   : > { %604 = vpow2.f32 %v357_v54 }
 0x128   : > { %v601_v55 = vpop.eup %600 }
 0x129   : > { %v603_v56 = vpop.eup %602  ;;  %v361_v60 = vmul.f32 %v601_v55, %v287_v6  ;;  %v362_v61 = vmul.f32 %v601_v55, %v288_v7  ;;  %v363_v62 = vmul.f32 %v601_v55, %v289_v8  ;;  %v364_v63 = vmul.f32 %v601_v55, %v290_v9 }
 0x12a   : > { %v359_v57 = vadd.f32 %v603_v56, %v601_v55  ;;  %v605_v58 = vpop.eup %604  ;;  %v365_v0 = vmul.f32 %v603_v56, %v291_v15  ;;  %v366_v1 = vmul.f32 %v603_v56, %v292_v16  ;;  %v367_v2 = vmul.f32 %v603_v56, %v293_v17 }
 0x12b   : > { %v368_v3 = vmul.f32 %v603_v56, %v294_v25  ;;  %v373_v12 = vmul.f32 %v605_v58, %v295_v18  ;;  %v374_v13 = vmul.f32 %v605_v58, %v296_v19  ;;  %v375_v14 = vmul.f32 %v605_v58, %v297_v20 }
 0x12c   : > { %v360_v59 = vadd.f32 %v605_v58, %v359_v57  ;;  %v369_v4 = vadd.f32 %v365_v0, %v361_v60  ;;  %v370_v5 = vadd.f32 %v366_v1, %v362_v61  ;;  %v371_v10 = vadd.f32 %v367_v2, %v363_v62 }
 0x12d   : > { %v372_v11 = vadd.f32 %v368_v3, %v364_v63  ;;  %v376_v21 = vmul.f32 %v605_v58, %v298_v29 }
 0x12e   : > { %606 = vrcp.f32 %v360_v59  ;;  %v377_v6 = vadd.f32 %v373_v12, %v369_v4  ;;  %v378_v7 = vadd.f32 %v374_v13, %v370_v5  ;;  %v379_v8 = vadd.f32 %v375_v14, %v371_v10 }
 0x12f   : > { %v380_v9 = vadd.f32 %v376_v21, %v372_v11 }
 0x138   : > { %v607_v15 = vpop.eup %606 }
 0x139   : > { %v382_v16 = vmul.f32 %v607_v15, %v377_v6  ;;  %v383_v17 = vmul.f32 %v607_v15, %v378_v7  ;;  %v384_v22 = vmul.f32 %v607_v15, %v379_v8  ;;  %v385_v23 = vmul.f32 %v607_v15, %v380_v9 }
 0x13b   : > { %386 = vst [vmem:[%s286_s6] sm:$0xff] %v382_v16  ;;  %387 = vst [vmem:[%s286_s6 + $0x8] sm:$0xff] %v383_v17 }
 0x13c   : > { %388 = vst [vmem:[%s286_s6 + $0x10] sm:$0xff] %v384_v22  ;;  %389 = vst [vmem:[%s286_s6 + $0x18] sm:$0xff] %v385_v23 }
 0x13d   : > { %711 = shalt.err (!%p708_p8)
}
 0x13e   : > { %s712_s14 = scalar_lea.hbm %s993_s29, 512  ;;  %s716_s5 = scalar_lea.hbm %s1041_s4, 1024 }
 0x13f   : > { %p713_p13 = scmp.ne.s32.totalorder %s993_s29, %s712_s14  ;;  %p717_p3 = scmp.lt.u32.totalorder %s993_s29, %s1041_s4 }
 0x140   : > { %p718_p4 = scmp.lt.u32.totalorder %s716_s5, %s712_s14  ;;  %p720_p10 = scmp.lt.u32.totalorder %s712_s14, %s993_s29 }
 0x141   : > { %p714_p11 = pnand %p713_p13, %p1060_p5 }
 0x142   : > { %p719_p2 = por %p718_p4, %p717_p3 }
 0x143   : > { %p715_p1 = pneg %p714_p11 }
 0x144   : > { %p721_p7 = por %p720_p10, %p719_p2 }
 0x146   : > { %p722_p9 = pnand %p721_p7, %p715_p1 }
 0x148   : > { %725 = shalt.err (!%p722_p9)
}
 0x149   : > { %550 = dma.vmem_to_hbm [thread:$0]  (%p1060_p5), %s995_s7, 512, %s993_s29, %s391_s19  }
 0x14a PF: > { %s417_s22 = sand.u32 1, %s756_s15   ;;  %p1061_p6 = scmp.ne.s32.totalorder %s1050_s27, 0 }
 0x14b   : > { %p1062_p12 = scmp.ge.s32.totalorder %s768_s18, 2  ;;  %s418_s13 = scalar_lea.sflag [#allocation4], %s417_s22 }
 0x14d   : > { %p563_p0 = pnand %p1062_p12, %p1061_p6 }
 0x14f   : > { %751 = dma.done.wait (!%p563_p0), %s418_s13, 512  }
 0x150   : > { %753 = vsyncadd (!%p563_p0), %s418_s13, 4294966784  ;;  %s1063_s25 = sld [smem:[#allocation12_spill]]  ;;  %p20_p8 = scmp.ge.s32.totalorder %s824_s21, 4  }
 0x151   : > { %s1064_s15 = smov %s760_s16  ;;  %s1065_s16 = smov %s764_s17 }
 0x152   : > { %s1067_s18 = smov %s824_s21  ;;  %22 = sbr.rel (!%p20_p8) target bundleno = 9 (0x9), region = 105 }
 0x156   : > { %s1066_s17 = smov %s1063_s25 }
 0x159   :  { %423 = vsyncpa [#allocation3], 1 }
 0x15a   :  { %425 = vsyncpa [#allocation3 + $0x1], 1 }
 0x15b   :  { %426 = vsyncpa [#allocation6], 1 }
 0x15c   :  { %428 = vsyncpa [#allocation6 + $0x1], 1 }
 0x15d   :  { %429 = vsyncpa [#allocation4], 1 }
 0x15e   :  { %431 = vsyncpa [#allocation4 + $0x1], 1 }

</bundles_post_ra>
